<compile_context>
chip_gen: v5e
topology: v5e:2x2
jax: 0.10.0
libtpu: 0.0.40
codegen_flags: <defaults>
</compile_context>

<pallas_src>
import jax
import jax.numpy as jnp
from jax.experimental import pallas as pl
from jax.experimental.pallas import tpu as pltpu


def _round_up(n, m):
    return ((n + m - 1) // m) * m


def predictor_kernel(x_ref, w1_ref, b1_ref, w2_ref, b2_ref, o_ref):
    # x : [TB, F] f32   (batch rows on sublanes, features on lanes)
    # w1: [F, H]  bf16  (VMEM-resident across grid steps)
    # b1: [1, H]  f32
    # w2: [1, H]  f32   (second Linear's weight, as a row)
    # b2: [1, 1]  f32   (SMEM scalar)
    # o : [TB, 1] f32
    x = x_ref[...].astype(jnp.bfloat16)                               # MXU-native lhs
    h = jnp.dot(x, w1_ref[...], preferred_element_type=jnp.float32)   # [TB, H] (MXU)
    h = jnp.sin(h + b1_ref[...])                                      # bias + sin in f32
    # Linear(32 -> 1) as VPU multiply + lane reduction (avoid N=1 MXU matmul).
    y = jnp.sum(h * w2_ref[...], axis=1, keepdims=True) + b2_ref[0, 0]
    o_ref[...] = y.astype(o_ref.dtype)


def predictor_forward(x, w1, b1, w2, b2, *, tile_b=1024):
    """Eval-mode forward of `Predictor`.

    x : [B, F]; w1: [F, H]; b1: [H]; w2: [H, 1]; b2: [1].  Returns [B, 1] f32.
    """
    B, F = x.shape
    H = w1.shape[1]

    # Batch tile: multiple of 8 sublanes, capped at the (rounded-up) batch.
    tb = min(_round_up(tile_b, 8), _round_up(B, 8))
    n_tiles = pl.cdiv(B, tb)                      # edge tile handled by Pallas clipping

    x = x.astype(jnp.float32)
    w1c = w1.astype(jnp.bfloat16)                           # [F, H]
    b1c = jnp.asarray(b1, jnp.float32).reshape(1, H)        # [1, H]
    w2c = jnp.asarray(w2, jnp.float32).reshape(1, H)        # [1, H]
    b2c = jnp.asarray(b2, jnp.float32).reshape(1, 1)        # SMEM scalar

    out = pl.pallas_call(
        predictor_kernel,
        out_shape=jax.ShapeDtypeStruct((B, 1), jnp.float32),
        grid=(n_tiles,),
        in_specs=[
            # x streams along the batch axis (auto-pipelined / double-buffered).
            pl.BlockSpec((tb, F), lambda i: (i, 0)),
            # Weights/biases: constant block index -> fetched once, VMEM-resident.
            pl.BlockSpec((F, H), lambda i: (0, 0)),
            pl.BlockSpec((1, H), lambda i: (0, 0)),
            pl.BlockSpec((1, H), lambda i: (0, 0)),
            # b2 lives in SMEM as a scalar (no padded VMEM tile / extra DMA).
            pl.BlockSpec(memory_space=pltpu.MemorySpace.SMEM),
        ],
        out_specs=pl.BlockSpec((tb, 1), lambda i: (i, 0)),
        compiler_params=pltpu.CompilerParams(
            # Independent batch tiles: shard grid steps across TCs (v7x).
            dimension_semantics=("parallel",),
        ),
    )(x, w1c, b1c, w2c, b2c)

    return out


def init_params(key, input_dim=40, hidden=32):
    # Deterministic init mimicking nn.Linear's uniform(-1/sqrt(fan_in), 1/sqrt(fan_in)).
    k1, k2, k3, k4 = jax.random.split(key, 4)
    bound1 = 1.0 / (input_dim ** 0.5)
    bound2 = 1.0 / (hidden ** 0.5)
    w1 = jax.random.uniform(k1, (input_dim, hidden), jnp.float32, -bound1, bound1)
    b1 = jax.random.uniform(k2, (hidden,), jnp.float32, -bound1, bound1)
    w2 = jax.random.uniform(k3, (hidden, 1), jnp.float32, -bound2, bound2)
    b2 = jax.random.uniform(k4, (1,), jnp.float32, -bound2, bound2)
    return w1, b1, w2, b2


if __name__ == "__main__":
    key = jax.random.PRNGKey(0)
    k_x, k_x2, k_p = jax.random.split(key, 3)

    F, H = 40, 32
    w1, b1, w2, b2 = init_params(k_p, input_dim=F, hidden=H)

    def reference(xx):
        # Dropout is identity in eval mode.
        return jnp.sin(xx @ w1 + b1) @ w2 + b2

    # Small case: single batch tile.
    B = 8
    x = jax.random.normal(k_x, (B, F), jnp.float32)
    out = jax.block_until_ready(predictor_forward(x, w1, b1, w2, b2))
    assert out.shape == (B, 1)
    # Tolerance relaxed vs pure-f32 because matmul inputs are cast to bf16.
    assert jnp.allclose(out, reference(x), atol=5e-2, rtol=0.0), "single-tile mismatch"

    # Multi-tile case: exercises the batch grid + partial last tile (300 = 2*128 + 44).
    B2 = 300
    x2 = jax.random.normal(k_x2, (B2, F), jnp.float32)
    out2 = jax.block_until_ready(predictor_forward(x2, w1, b1, w2, b2, tile_b=128))
    assert out2.shape == (B2, 1)
    assert jnp.allclose(out2, reference(x2), atol=5e-2, rtol=0.0), "multi-tile mismatch"

    print("KERNEL_OK")
</pallas_src>

<mosaic_0001>
module attributes {stable_mosaic.version = 11 : i64} {
  func.func @predictor_kernel(%arg0: i32, %arg1: memref<8x40xf32, #tpu.memory_space<vmem>>, %arg2: memref<40x32xbf16, #tpu.memory_space<vmem>>, %arg3: memref<1x32xf32, #tpu.memory_space<vmem>>, %arg4: memref<1x32xf32, #tpu.memory_space<vmem>>, %arg5: memref<1x1xf32, #tpu.memory_space<smem>>, %arg6: memref<8x1xf32, #tpu.memory_space<vmem>>) attributes {dimension_semantics = [#tpu.dimension_semantics<parallel>], iteration_bounds = array<i64: 1>, scalar_prefetch = 0 : i64, scratch_operands = 0 : i64, tpu.core_type = #tpu.core_type<tc>, window_params = [{transform_indices = @transform_0, window_bounds = array<i64: 8, 40>}, {pipeline_mode = #tpu.pipeline_mode<synchronous>, transform_indices = @transform_1, window_bounds = array<i64: 40, 32>}, {pipeline_mode = #tpu.pipeline_mode<synchronous>, transform_indices = @transform_2, window_bounds = array<i64: 1, 32>}, {pipeline_mode = #tpu.pipeline_mode<synchronous>, transform_indices = @transform_3, window_bounds = array<i64: 1, 32>}, {transform_indices = @transform_4, window_bounds = array<i64: 1, 1>}, {transform_indices = @transform_5, window_bounds = array<i64: 8, 1>}]} {
    %c0 = arith.constant 0 : index
    %c0_0 = arith.constant 0 : index
    %0 = vector.load %arg1[%c0, %c0_0] : memref<8x40xf32, #tpu.memory_space<vmem>>, vector<8x40xf32>
    %1 = arith.truncf %0 : vector<8x40xf32> to vector<8x40xbf16>
    %c0_1 = arith.constant 0 : index
    %c0_2 = arith.constant 0 : index
    %2 = vector.load %arg2[%c0_1, %c0_2] : memref<40x32xbf16, #tpu.memory_space<vmem>>, vector<40x32xbf16>
    %cst = arith.constant dense<0.000000e+00> : vector<8x32xf32>
    %3 = tpu.matmul %1, %2, %cst {dimension_numbers = #tpu.dot_dimension_numbers<[1], [0], [0], [1], [0, 0, 1, 1], [], []>} : vector<8x40xbf16>, vector<40x32xbf16>, vector<8x32xf32> -> vector<8x32xf32>
    %c0_3 = arith.constant 0 : index
    %c0_4 = arith.constant 0 : index
    %4 = vector.load %arg3[%c0_3, %c0_4] : memref<1x32xf32, #tpu.memory_space<vmem>>, vector<1x32xf32>
    %5 = vector.broadcast %4 : vector<1x32xf32> to vector<8x32xf32>
    %6 = arith.addf %3, %5 : vector<8x32xf32>
    %7 = math.sin %6 : vector<8x32xf32>
    %c0_5 = arith.constant 0 : index
    %c0_6 = arith.constant 0 : index
    %8 = vector.load %arg4[%c0_5, %c0_6] : memref<1x32xf32, #tpu.memory_space<vmem>>, vector<1x32xf32>
    %9 = vector.broadcast %8 : vector<1x32xf32> to vector<8x32xf32>
    %10 = arith.mulf %7, %9 : vector<8x32xf32>
    %cst_7 = arith.constant dense<0.000000e+00> : vector<8xf32>
    %11 = vector.multi_reduction <add>, %10, %cst_7 [1] : vector<8x32xf32> to vector<8xf32>
    %12 = vector.shape_cast %11 : vector<8xf32> to vector<8x1xf32>
    %c0_8 = arith.constant 0 : index
    %c0_9 = arith.constant 0 : index
    %13 = memref.load %arg5[%c0_8, %c0_9] : memref<1x1xf32, #tpu.memory_space<smem>>
    %14 = vector.broadcast %13 : f32 to vector<8x1xf32>
    %15 = arith.addf %12, %14 : vector<8x1xf32>
    %c0_10 = arith.constant 0 : index
    %c0_11 = arith.constant 0 : index
    %16 = vector.load %arg6[%c0_10, %c0_11] : memref<8x1xf32, #tpu.memory_space<vmem>>, vector<8x1xf32>
    tpu.vector_store %arg6[%c0_10, %c0_11], %15 {strides = array<i32>} : memref<8x1xf32, #tpu.memory_space<vmem>>, vector<8x1xf32>,
    return
  }
  func.func @transform_0(%arg0: i32) -> (i32, i32) {
    %c0_i32 = arith.constant 0 : i32
    %c0_i32_0 = arith.constant 0 : i32
    return %arg0, %c0_i32 : i32, i32
  }
  func.func @transform_1(%arg0: i32) -> (i32, i32) {
    %c0_i32 = arith.constant 0 : i32
    %c0_i32_0 = arith.constant 0 : i32
    %c0_i32_1 = arith.constant 0 : i32
    return %c0_i32, %c0_i32_0 : i32, i32
  }
  func.func @transform_2(%arg0: i32) -> (i32, i32) {
    %c0_i32 = arith.constant 0 : i32
    %c0_i32_0 = arith.constant 0 : i32
    %c0_i32_1 = arith.constant 0 : i32
    return %c0_i32, %c0_i32_0 : i32, i32
  }
  func.func @transform_3(%arg0: i32) -> (i32, i32) {
    %c0_i32 = arith.constant 0 : i32
    %c0_i32_0 = arith.constant 0 : i32
    %c0_i32_1 = arith.constant 0 : i32
    return %c0_i32, %c0_i32_0 : i32, i32
  }
  func.func @transform_4(%arg0: i32) -> (i32, i32) {
    %c0_i32 = arith.constant 0 : i32
    %c0_i32_0 = arith.constant 0 : i32
    %c0_i32_1 = arith.constant 0 : i32
    return %c0_i32, %c0_i32_0 : i32, i32
  }
  func.func @transform_5(%arg0: i32) -> (i32, i32) {
    %c0_i32 = arith.constant 0 : i32
    %c0_i32_0 = arith.constant 0 : i32
    return %arg0, %c0_i32 : i32, i32
  }
}

</mosaic_0001>

<bundles_post_ra>
// kernel: tpu_custom_call.1
= control target key start
LH: loop header
LB: loop body
LE: loop exit
PB: predicated region body
PF: predicated region fallthrough
CT: control target
= control target key end

     0   :  { %vm52_vm0 = vcmask 1043456   ;;  %vm48_vm1 = vcmask 326656   ;;  %v265_v23 = vmov 683565275   ;;  %v266_v25 = vmov 2475754826   ;;  %s382_s1 = inlined_call_operand.vmem [shape: bf16[40,32], index: 1, kind: input, shape index: {}]   ;;  %s383_s2 = inlined_call_operand.vmem [shape: f32[1,32], index: 2, kind: input, shape index: {}]   ;;  %s384_s0 = inlined_call_operand.vmem [shape: f32[8,40], index: 0, kind: input, shape index: {}]   ;;  %s385_s3 = inlined_call_operand.vmem [shape: f32[1,32], index: 3, kind: input, shape index: {}]   ;;  %s386_s4 = inlined_call_operand.<no memory space> [shape: f32[1,1], index: 4, kind: input, shape index: {}]   ;;  %s387_s5 = inlined_call_operand.vmem [shape: f32[8,1], index: 5, kind: output, shape index: {}]  }
   0x1   :  { %v28_v0 = vld [vmem:[%s382_s1 + $0x10] sm:$0xf]  ;;  %v255_v4 = vld [vmem:[%s382_s1 + $0x8] sm:$0xff]  ;;  %v254_v5 = vld [vmem:[%s382_s1] sm:$0xff]  ;;  %v267_v28 = vmov 2131351028  }
   0x2   :  { %v42_v1 = vunpack.c.l.b16 %v28_v0  ;;  %v22_v6 = vld [vmem:[%s384_s0] sm:$0xff]  ;;  %v268_v31 = vmov 2102212464   ;;  %v269_v34 = vmov 920167782  }
   0x3   :  { %v23_v7 = vpack.c.bf16 %v22_v6, %v22_v6  ;;  %v263_v8 = vld [vmem:[%s383_s2] ss:$0 sm:$0xff]  ;;  %v270_v37 = vmov 1326507024  }
   0x4   :  { %v45_v2 = vpack.c.b16 %v42_v1, %v42_v1 }
   0x6   :  { %v54_v3 = vsel %vm52_vm0, %v45_v2, 0 }
   0x7   :  { %61 = vmatpush.bf16.msra.mxu0 %v54_v3 }
   0xb   :  { %62 = vmatpush.bf16.msra.mxu0 %v255_v4 }
   0xf   :  { %63 = vmatpush.bf16.msra.mxu0 %v254_v5 }
  0x12   :  { %250 = vmatmul.msk.bf16.vlgmr.msra.gmra.mxu0 %vm48_vm1, %v23_v7 }
  0x8f   :  { %v65_v9 = vpop.f32.mrf.mxu0 }
  0x90   :  { %v317_v10 = vadd.f32 %v263_v8, %v65_v9 }
  0x92   :  { %v72_v11 = vand.u32 2139095040, %v317_v10  ;;  %v69_v14 = vand.u32 2147483647, %v317_v10  ;;  %vm71_vm14 = vcmp.lt.s32.totalorder %v317_v10, 0 }
  0x94   :  { %v73_v12 = vshrl.u32 %v72_v11, 23  ;;  %v76_v17 = vand.u32 8388607, %v69_v14  ;;  %v271_v11 = vmov 0   ;;  %vm70_vm15 = vcmp.le.f32.partialorder %v69_v14, 0.7853982 }
  0x96   :  { %v251_v13 = vadd.s32 4294967169, %v73_v12  ;;  %v77_v21 = vor.u32 8388608, %v76_v17 }
  0x97   :  { %v67_v15 = vpop.f32.mrf.mxu0 }
  0x98   :  { %v79_v16 = vadd.s32 1, %v251_v13  ;;  %v334_v44 = vshll.u32 %v77_v21, 8 }
  0x9a   :  { %vm80_vm2 = vcmp.gt.s32.totalorder %v79_v16, 0  ;;  %v118_v53 = vand.u32 65535, %v334_v44  ;;  %v119_v58 = vshrl.u32 %v334_v44, 16 }
  0x9b   :  { %v81_v18 = vsel %vm80_vm2, %v79_v16, 0 }
  0x9c   :  { %v83_v19 = vand.u32 31, %v81_v18  ;;  %v325_v22 = vshrl.u32 %v81_v18, 5 }
  0x9e   :  { %v323_v20 = vsub.s32 32, %v83_v19  ;;  %v86_v24 = vshll.u32 %v265_v23, %v83_v19  ;;  %v89_v26 = vshll.u32 %v266_v25, %v83_v19  ;;  %v92_v30 = vshll.u32 %v267_v28, %v83_v19 }
  0x9f   :  { %v95_v33 = vshll.u32 %v268_v31, %v83_v19  ;;  %v98_v36 = vshll.u32 %v269_v34, %v83_v19  ;;  %vm101_vm3 = vcmp.lt.s32.totalorder %v325_v22, 1  ;;  %vm104_vm4 = vcmp.lt.s32.totalorder %v325_v22, 4 }
  0xa0   :  { %v87_v27 = vshrl.u32 %v266_v25, %v323_v20  ;;  %v90_v29 = vshrl.u32 %v267_v28, %v323_v20  ;;  %v93_v32 = vshrl.u32 %v268_v31, %v323_v20  ;;  %v96_v35 = vshrl.u32 %v269_v34, %v323_v20 }
  0xa1   :  { %v99_v38 = vshrl.u32 %v270_v37, %v323_v20  ;;  %vm103_vm5 = vcmp.lt.s32.totalorder %v325_v22, 3  ;;  %vm102_vm6 = vcmp.lt.s32.totalorder %v325_v22, 2  ;;  %v85_v17 = vshrl.u32 %v265_v23, %v323_v20 }
  0xa2   :  { %v88_v39 = vor.u32 %v87_v27, %v86_v24  ;;  %v91_v40 = vor.u32 %v90_v29, %v89_v26  ;;  %v94_v41 = vor.u32 %v93_v32, %v92_v30  ;;  %v97_v42 = vor.u32 %v96_v35, %v95_v33 }
  0xa3   :  { %v100_v43 = vor.u32 %v99_v38, %v98_v36 }
  0xa4   :  { %v109_v45 = vsel %vm101_vm3, %v88_v39, %v91_v40  ;;  %v113_v46 = vsel %vm101_vm3, %v91_v40, %v94_v41  ;;  %v110_v47 = vsel %vm104_vm4, %v97_v42, 920167782  ;;  %v106_v9 = vsel %vm104_vm4, %v94_v41, 2102212464 }
  0xa5   :  { %v114_v48 = vsel %vm104_vm4, %v100_v43, 1326507024  ;;  %v111_v49 = vsel %vm103_vm5, %v94_v41, %v110_v47  ;;  %v105_v27 = vsel %vm101_vm3, %v85_v17, %v88_v39  ;;  %v107_v28 = vsel %vm103_vm5, %v91_v40, %v106_v9 }
  0xa6   :  { %v115_v50 = vsel %vm103_vm5, %v97_v42, %v114_v48  ;;  %v112_v51 = vsel %vm102_vm6, %v109_v45, %v111_v49  ;;  %v108_v33 = vsel %vm102_vm6, %v105_v27, %v107_v28  ;;  %vm212_vm3 = vweird.f32 %v317_v10 }
  0xa7   :  { %v116_v52 = vsel %vm102_vm6, %v113_v46, %v115_v50  ;;  %v142_v56 = vand.u32 65535, %v112_v51  ;;  %v143_v57 = vshrl.u32 %v112_v51, 16  ;;  %v162_v36 = vmul.u32 %v334_v44, %v108_v33 }
  0xa8   :  { %v120_v54 = vand.u32 65535, %v116_v52  ;;  %v121_v55 = vshrl.u32 %v116_v52, 16  ;;  %vm229_vm4 = vcmask 261120   ;;  %vm236_vm5 = vcmask 7168  }
  0xa9   :  { %v145_v60 = vmul.u32 %v143_v57, %v118_v53  ;;  %v146_v62 = vmul.u32 %v142_v56, %v119_v58  ;;  %v144_v1 = vmul.u32 %v142_v56, %v118_v53  ;;  %v147_v4 = vmul.u32 %v143_v57, %v119_v58 }
  0xaa   :  { %v123_v59 = vmul.u32 %v121_v55, %v118_v53  ;;  %v124_v61 = vmul.u32 %v120_v54, %v119_v58  ;;  %v122_v63 = vmul.u32 %v120_v54, %v118_v53  ;;  %v125_v3 = vmul.u32 %v121_v55, %v119_v58 }
  0xab   :  { %v148_v2 = vshll.u32 %v145_v60, 16  ;;  %v150_v6 = vshll.u32 %v146_v62, 16  ;;  %v149_v25 = vshrl.u32 %v145_v60, 16  ;;  %v151_v31 = vshrl.u32 %v146_v62, 16 }
  0xac   :  { %v126_v0 = vshll.u32 %v123_v59, 16  ;;  %v128_v5 = vshll.u32 %v124_v61, 16  ;;  %v127_v21 = vshrl.u32 %v123_v59, 16  ;;  %v129_v29 = vshrl.u32 %v124_v61, 16 }
  0xad   :  { %vm152_vm8 = vc.u32 %v144_v1, %v148_v2  ;;  %v154_v8 = vadd.s32 %v148_v2, %v144_v1 }
  0xae   :  { %vm130_vm7 = vc.u32 %v122_v63, %v126_v0  ;;  %v132_v7 = vadd.s32 %v126_v0, %v122_v63  ;;  %v153_v13 = vsel %vm152_vm8, 1, %v271_v11 }
  0xaf   :  { %v131_v12 = vsel %vm130_vm7, 1, %v271_v11  ;;  %v155_v16 = vadd.s32 %v153_v13, %v147_v4  ;;  %vm156_vm10 = vc.u32 %v154_v8, %v150_v6  ;;  %v158_v23 = vadd.s32 %v154_v8, %v150_v6 }
  0xb0   :  { %v133_v15 = vadd.s32 %v131_v12, %v125_v3  ;;  %vm134_vm9 = vc.u32 %v132_v7, %v128_v5  ;;  %v157_v19 = vsel %vm156_vm10, 1, %v271_v11 }
  0xb1   :  { %v135_v18 = vsel %vm134_vm9, 1, %v271_v11  ;;  %v159_v26 = vadd.s32 %v157_v19, %v155_v16 }
  0xb2   :  { %v137_v24 = vadd.s32 %v135_v18, %v133_v15 }
  0xb3   :  { %v160_v32 = vadd.s32 %v159_v26, %v149_v25 }
  0xb4   :  { %v138_v30 = vadd.s32 %v137_v24, %v127_v21  ;;  %v264_v21 = vld [vmem:[%s385_s3] ss:$0 sm:$0xff] }
  0xb5   :  { %v161_v34 = vadd.s32 %v160_v32, %v151_v31 }
  0xb6   :  { %v139_v20 = vadd.s32 %v138_v30, %v129_v29  ;;  %v234_v30 = vstv %s386_s4 }
  0xb7   :  { %v165_v35 = vadd.s32 1, %v161_v34 }
  0xb8   :  { %vm164_vm11 = vc.u32 %v139_v20, %v158_v23  ;;  %v163_v48 = vadd.s32 %v158_v23, %v139_v20 }
  0xb9   :  { %v166_v37 = vsel %vm164_vm11, %v165_v35, %v161_v34 }
  0xba   :  { %v167_v38 = vadd.s32 %v166_v37, %v162_v36 }
  0xbc   :  { %v168_v39 = vadd.s32 536870912, %v167_v38 }
  0xbe   :  { %v169_v41 = vshrl.u32 %v168_v39, 30 }
  0xc0   :  { %v170_v42 = vshll.u32 %v169_v41, 30  ;;  %v193_v61 = vsub.s32 4, %v169_v41 }
  0xc2   :  { %v171_v40 = vsub.s32 %v167_v38, %v170_v42  ;;  %v194_v2 = vsel %vm71_vm14, %v193_v61, %v169_v41 }
  0xc3   :  { %v196_v5 = vsel %vm70_vm15, 0, %v194_v2 }
  0xc4   :  { %vm172_vm12 = vcmp.lt.s32.totalorder %v171_v40, 0  ;;  %v173_v43 = vsub.s32 0, %v171_v40  ;;  %v213_v11 = vadd.s32 3, %v196_v5 }
  0xc6   :  { %v174_v45 = vsel %vm172_vm12, %v173_v43, %v171_v40  ;;  %v214_v16 = vand.u32 3, %v213_v11 }
  0xc7   :  { %v175_v46 = vclz %v174_v45 }
  0xc8   :  { %vm216_vm0 = vcmp.eq.s32.totalorder %v214_v16, 0  ;;  %vm219_vm1 = vcmp.eq.s32.totalorder %v214_v16, 2  ;;  %vm215_vm2 = vcmp.lt.s32.totalorder %v214_v16, 2 }
  0xc9   :  { %v252_v47 = vadd.s32 4294967294, %v175_v46 }
  0xcb   :  { %vm253_vm13 = vcmp.lt.s32.totalorder %v252_v47, 0 }
  0xcc   :  { %v178_v22 = vsel %vm253_vm13, 0, %v252_v47 }
  0xcd   :  { %v179_v49 = vsub.s32 32, %v178_v22  ;;  %v183_v50 = vsub.s32 4294967266, %v178_v22  ;;  %v180_v51 = vshll.u32 %v171_v40, %v178_v22 }
  0xcf   :  { %v181_v52 = vshrl.u32 %v163_v48, %v179_v49  ;;  %v184_v53 = vadd.s32 127, %v183_v50 }
  0xd1   :  { %v182_v44 = vor.u32 %v181_v52, %v180_v51  ;;  %v185_v54 = vshll.u32 %v184_v53, 23 }
  0xd3   :  { %v186_v55 = vor.u32 4788187, %v185_v54  ;;  %v189_v57 = vcvt.s32.f32 %v182_v44 }
  0xd5   :  { %v187_v56 = vand.u32 2147483647, %v186_v55 }
  0xd7   :  { %v190_v58 = vmul.f32 %v189_v57, %v187_v56 }
  0xd9   :  { %v191_v59 = vxor.u32 2147483648, %v190_v58 }
  0xdb   :  { %v192_v60 = vsel %vm71_vm14, %v191_v59, %v190_v58 }
  0xdc   :  { %v195_v62 = vsel %vm70_vm15, %v317_v10, %v192_v60 }
  0xdd   :  { %v197_v63 = vmul.f32 %v195_v62, %v195_v62 }
  0xdf   :  { %v198_v0 = vmul.f32 -0.001358992, %v197_v63  ;;  %v205_v1 = vmul.f32 -0.00019511016, %v197_v63 }
  0xe1   :  { %v199_v3 = vadd.f32 0.041655596, %v198_v0  ;;  %v206_v4 = vadd.f32 0.008332121, %v205_v1 }
  0xe3   :  { %v200_v6 = vmul.f32 %v199_v3, %v197_v63  ;;  %v207_v7 = vmul.f32 %v206_v4, %v197_v63 }
  0xe5   :  { %v201_v8 = vadd.f32 -0.4999988, %v200_v6  ;;  %v208_v9 = vadd.f32 -0.16666654, %v207_v7 }
  0xe7   :  { %v202_v12 = vmul.f32 %v201_v8, %v197_v63  ;;  %v209_v13 = vmul.f32 %v208_v9, %v197_v63 }
  0xe9   :  { %v203_v15 = vadd.f32 1.0, %v202_v12  ;;  %v210_v14 = vadd.f32 1.0, %v209_v13 }
  0xeb   :  { %v211_v17 = vmul.f32 %v210_v14, %v195_v62  ;;  %v220_v18 = vxor.u32 2147483648, %v203_v15 }
  0xed   :  { %v217_v19 = vxor.u32 2147483648, %v211_v17  ;;  %v221_v25 = vsel %vm219_vm1, %v220_v18, %v211_v17 }
  0xef   :  { %v218_v24 = vsel %vm216_vm0, %v203_v15, %v217_v19 }
  0xf0   :  { %v222_v26 = vsel %vm215_vm2, %v218_v24, %v221_v25 }
  0xf1   :  { %v223_v27 = vsel %vm212_vm3, nan, %v222_v26 }
  0xf2   :  { %v228_v28 = vmul.f32 %v264_v21, %v223_v27 }
  0xf4   :  { %v230_v29 = vsel %vm229_vm4, %v228_v28, 0.0 }
  0xf5   :  { %231 = vadd.xlane.f32.xlu0 %v230_v29 }
 0x168   :  { %v232_v31 = vpop.xlane.xlu0 %231 }
 0x169   :  { %v235_v32 = vadd.f32 %v234_v30, %v232_v31 }
 0x16b   :  { %237 = vst.msk [vmem:[%s387_s5] sm:$0xff] %vm236_vm5, %v235_v32 }

</bundles_post_ra>
